<compile_context>
chip_gen: v7x
topology: tpu7x:2x2x1
jax: 0.10.0
libtpu: 0.0.40
codegen_flags: <defaults>
</compile_context>

<pallas_src>
import functools
import math

import numpy as np
import jax
import jax.numpy as jnp
from jax import lax
from jax.experimental import pallas as pl
from jax.experimental.pallas import tpu as pltpu


# ----------------------------------------------------------------------------
# In-kernel helpers
# ----------------------------------------------------------------------------
def _layernorm(x, gamma, beta, eps=1e-5):
    # x: (T, E), gamma/beta: (1, E). Biased variance, matches nn.LayerNorm.
    mean = jnp.mean(x, axis=-1, keepdims=True)
    xc = x - mean
    var = jnp.mean(xc * xc, axis=-1, keepdims=True)
    inv = lax.rsqrt(var + eps)
    return xc * inv * gamma + beta


# ----------------------------------------------------------------------------
# Kernels
# ----------------------------------------------------------------------------
def _attn_sublayer_kernel(x_ref, wqkv_ref, bqkv_ref, wo_ref, bo_ref,
                          g_ref, b_ref, out_ref, *, num_heads):
    # x_ref: (1, T, E); weights are full blocks.
    x = x_ref[0].astype(jnp.float32)                      # (T, E)
    T, E = x.shape
    hd = E // num_heads
    scale = 1.0 / math.sqrt(hd)

    wqkv = wqkv_ref[...].astype(jnp.float32)              # (3E, E) torch layout
    bqkv = bqkv_ref[...].astype(jnp.float32)              # (1, 3E)
    qkv = jnp.dot(x, wqkv.T, preferred_element_type=jnp.float32) + bqkv
    q = qkv[:, 0:E]
    k = qkv[:, E:2 * E]
    v = qkv[:, 2 * E:3 * E]

    ctx_heads = []
    for h in range(num_heads):                            # static small loop
        qh = q[:, h * hd:(h + 1) * hd]                    # (T, hd)
        kh = k[:, h * hd:(h + 1) * hd]
        vh = v[:, h * hd:(h + 1) * hd]
        s = jnp.dot(qh, kh.T, preferred_element_type=jnp.float32) * scale  # (T, T)
        s = s - jnp.max(s, axis=-1, keepdims=True)        # stable softmax
        p = jnp.exp(s)
        p = p / jnp.sum(p, axis=-1, keepdims=True)
        ctx_heads.append(jnp.dot(p, vh, preferred_element_type=jnp.float32))
    ctx = jnp.concatenate(ctx_heads, axis=-1)             # (T, E)

    wo = wo_ref[...].astype(jnp.float32)                  # (E, E)
    bo = bo_ref[...].astype(jnp.float32)                  # (1, E)
    attn_out = jnp.dot(ctx, wo.T, preferred_element_type=jnp.float32) + bo

    y = _layernorm(x + attn_out,
                   g_ref[...].astype(jnp.float32),
                   b_ref[...].astype(jnp.float32))
    out_ref[0] = y.astype(out_ref.dtype)


def _ffn_sublayer_kernel(x_ref, w1_ref, b1_ref, w2_ref, b2_ref,
                         g_ref, b_ref, out_ref):
    x = x_ref[0].astype(jnp.float32)                      # (T, E)
    h = jnp.dot(x, w1_ref[...].astype(jnp.float32).T,
                preferred_element_type=jnp.float32) + b1_ref[...].astype(jnp.float32)
    h = jnp.maximum(h, 0.0)                               # ReLU (torch default)
    o = jnp.dot(h, w2_ref[...].astype(jnp.float32).T,
                preferred_element_type=jnp.float32) + b2_ref[...].astype(jnp.float32)
    y = _layernorm(x + o,
                   g_ref[...].astype(jnp.float32),
                   b_ref[...].astype(jnp.float32))
    out_ref[0] = y.astype(out_ref.dtype)


def _linear_kernel(x_ref, w_ref, b_ref, out_ref):
    x = x_ref[0].astype(jnp.float32)                      # (T, E)
    y = jnp.dot(x, w_ref[...].astype(jnp.float32).T,
                preferred_element_type=jnp.float32) + b_ref[...].astype(jnp.float32)
    out_ref[0] = y.astype(out_ref.dtype)


# ----------------------------------------------------------------------------
# pallas_call wrappers
# ----------------------------------------------------------------------------
def _full2d(shape):
    return pl.BlockSpec(shape, lambda b: (0, 0))


def _attention_sublayer(x, lyr, *, num_heads):
    B, T, E = x.shape
    kernel = functools.partial(_attn_sublayer_kernel, num_heads=num_heads)
    return pl.pallas_call(
        kernel,
        out_shape=jax.ShapeDtypeStruct((B, T, E), x.dtype),
        grid_spec=pltpu.PrefetchScalarGridSpec(
            num_scalar_prefetch=0,
            grid=(B,),
            in_specs=[
                pl.BlockSpec((1, T, E), lambda b: (b, 0, 0)),
                _full2d((3 * E, E)),
                _full2d((1, 3 * E)),
                _full2d((E, E)),
                _full2d((1, E)),
                _full2d((1, E)),
                _full2d((1, E)),
            ],
            out_specs=pl.BlockSpec((1, T, E), lambda b: (b, 0, 0)),
        ),
        compiler_params=pltpu.CompilerParams(
            dimension_semantics=("parallel",)),
    )(x, lyr["wqkv"], lyr["bqkv"], lyr["wo"], lyr["bo"],
      lyr["ln1_g"], lyr["ln1_b"])


def _ffn_sublayer(x, lyr):
    B, T, E = x.shape
    FF = lyr["w1"].shape[0]
    return pl.pallas_call(
        _ffn_sublayer_kernel,
        out_shape=jax.ShapeDtypeStruct((B, T, E), x.dtype),
        grid_spec=pltpu.PrefetchScalarGridSpec(
            num_scalar_prefetch=0,
            grid=(B,),
            in_specs=[
                pl.BlockSpec((1, T, E), lambda b: (b, 0, 0)),
                _full2d((FF, E)),
                _full2d((1, FF)),
                _full2d((E, FF)),
                _full2d((1, E)),
                _full2d((1, E)),
                _full2d((1, E)),
            ],
            out_specs=pl.BlockSpec((1, T, E), lambda b: (b, 0, 0)),
        ),
        compiler_params=pltpu.CompilerParams(
            dimension_semantics=("parallel",)),
    )(x, lyr["w1"], lyr["b1"], lyr["w2"], lyr["b2"],
      lyr["ln2_g"], lyr["ln2_b"])


def _final_linear(x, w, b):
    B, T, E = x.shape
    N = w.shape[0]
    return pl.pallas_call(
        _linear_kernel,
        out_shape=jax.ShapeDtypeStruct((B, T, N), x.dtype),
        grid_spec=pltpu.PrefetchScalarGridSpec(
            num_scalar_prefetch=0,
            grid=(B,),
            in_specs=[
                pl.BlockSpec((1, T, E), lambda b: (b, 0, 0)),
                _full2d((N, E)),
                _full2d((1, N)),
            ],
            out_specs=pl.BlockSpec((1, T, N), lambda b: (b, 0, 0)),
        ),
        compiler_params=pltpu.CompilerParams(
            dimension_semantics=("parallel",)),
    )(x, w, b)


def mel_decoder_forward(x, params, *, num_heads):
    """x: (B, T, E) -> mel: (B, n_mels, T). Matches MelDecoder.forward (eval)."""
    for lyr in params["layers"]:
        x = _attention_sublayer(x, lyr, num_heads=num_heads)
        x = _ffn_sublayer(x, lyr)
    mel = _final_linear(x, params["wl"], params["bl"])    # (B, T, n_mels)
    return jnp.transpose(mel, (0, 2, 1))                  # (B, n_mels, T)


# ----------------------------------------------------------------------------
# Pure-JAX reference (port of the PyTorch forward) for verification
# ----------------------------------------------------------------------------
def _reference_forward(x, params, num_heads):
    def layernorm(t, g, b, eps=1e-5):
        m = t.mean(-1, keepdims=True)
        v = ((t - m) ** 2).mean(-1, keepdims=True)
        return (t - m) / jnp.sqrt(v + eps) * g + b

    B, T, E = x.shape
    hd = E // num_heads
    for lyr in params["layers"]:
        qkv = x @ lyr["wqkv"].T + lyr["bqkv"]
        q, k, v = jnp.split(qkv, 3, axis=-1)
        def heads(t):
            return t.reshape(B, T, num_heads, hd).transpose(0, 2, 1, 3)
        qh, kh, vh = heads(q), heads(k), heads(v)
        s = jnp.einsum("bhqd,bhkd->bhqk", qh, kh) / math.sqrt(hd)
        p = jax.nn.softmax(s, axis=-1)
        ctx = jnp.einsum("bhqk,bhkd->bhqd", p, vh).transpose(0, 2, 1, 3).reshape(B, T, E)
        attn = ctx @ lyr["wo"].T + lyr["bo"]
        x = layernorm(x + attn, lyr["ln1_g"], lyr["ln1_b"])
        h = jnp.maximum(x @ lyr["w1"].T + lyr["b1"], 0.0)
        o = h @ lyr["w2"].T + lyr["b2"]
        x = layernorm(x + o, lyr["ln2_g"], lyr["ln2_b"])
    mel = x @ params["wl"].T + params["bl"]
    return jnp.transpose(mel, (0, 2, 1))


# ----------------------------------------------------------------------------
# Parameter init (deterministic)
# ----------------------------------------------------------------------------
def init_params(key, embed_dim, n_mels, num_layers, ff_dim):
    layers = []
    for _ in range(num_layers):
        key, k0, k1, k2, k3, k4, k5 = jax.random.split(key, 7)
        layers.append(dict(
            wqkv=0.2 * jax.random.normal(k0, (3 * embed_dim, embed_dim), jnp.float32),
            bqkv=0.02 * jax.random.normal(k1, (1, 3 * embed_dim), jnp.float32),
            wo=0.2 * jax.random.normal(k2, (embed_dim, embed_dim), jnp.float32),
            bo=0.02 * jax.random.normal(k3, (1, embed_dim), jnp.float32),
            ln1_g=jnp.ones((1, embed_dim), jnp.float32),
            ln1_b=jnp.zeros((1, embed_dim), jnp.float32),
            w1=0.2 * jax.random.normal(k4, (ff_dim, embed_dim), jnp.float32),
            b1=jnp.zeros((1, ff_dim), jnp.float32),
            w2=0.2 * jax.random.normal(k5, (embed_dim, ff_dim), jnp.float32),
            b2=jnp.zeros((1, embed_dim), jnp.float32),
            ln2_g=jnp.ones((1, embed_dim), jnp.float32),
            ln2_b=jnp.zeros((1, embed_dim), jnp.float32),
        ))
    key, ka, kb = jax.random.split(key, 3)
    return dict(
        layers=layers,
        wl=0.2 * jax.random.normal(ka, (n_mels, embed_dim), jnp.float32),
        bl=0.02 * jax.random.normal(kb, (1, n_mels), jnp.float32),
    )


if __name__ == "__main__":
    # Small shapes consistent with the module: batch=2, seq=8, embed_dim=32,
    # num_heads=4, num_layers=4, dim_feedforward=64, n_mels=16.
    B, T, E, H, FF, N_MELS, L = 2, 8, 32, 4, 64, 16, 4

    key = jax.random.PRNGKey(0)
    key, kx, kp = jax.random.split(key, 3)
    x = jax.random.normal(kx, (B, T, E), dtype=jnp.float32)
    params = init_params(kp, E, N_MELS, L, FF)

    fwd = jax.jit(functools.partial(mel_decoder_forward, num_heads=H))
    out = jax.block_until_ready(fwd(x, params))

    ref = jax.block_until_ready(_reference_forward(x, params, H))
    assert out.shape == (B, N_MELS, T), (out.shape, (B, N_MELS, T))
    np.testing.assert_allclose(np.asarray(out), np.asarray(ref),
                               rtol=2e-4, atol=2e-4)

    print("KERNEL_OK")
</pallas_src>

<mosaic_0001>
module attributes {stable_mosaic.version = 11 : i64} {
  func.func @_ffn_sublayer_kernel(%arg0: i32, %arg1: memref<1x8x32xf32, #tpu.memory_space<vmem>>, %arg2: memref<64x32xf32, #tpu.memory_space<vmem>>, %arg3: memref<1x64xf32, #tpu.memory_space<vmem>>, %arg4: memref<32x64xf32, #tpu.memory_space<vmem>>, %arg5: memref<1x32xf32, #tpu.memory_space<vmem>>, %arg6: memref<1x32xf32, #tpu.memory_space<vmem>>, %arg7: memref<1x32xf32, #tpu.memory_space<vmem>>, %arg8: memref<1x8x32xf32, #tpu.memory_space<vmem>>) attributes {dimension_semantics = [#tpu.dimension_semantics<parallel>], iteration_bounds = array<i64: 2>, scalar_prefetch = 0 : i64, scratch_operands = 0 : i64, tpu.core_type = #tpu.core_type<tc>, window_params = [{transform_indices = @transform_0, window_bounds = array<i64: 1, 8, 32>}, {pipeline_mode = #tpu.pipeline_mode<synchronous>, transform_indices = @transform_1, window_bounds = array<i64: 64, 32>}, {pipeline_mode = #tpu.pipeline_mode<synchronous>, transform_indices = @transform_2, window_bounds = array<i64: 1, 64>}, {pipeline_mode = #tpu.pipeline_mode<synchronous>, transform_indices = @transform_3, window_bounds = array<i64: 32, 64>}, {pipeline_mode = #tpu.pipeline_mode<synchronous>, transform_indices = @transform_4, window_bounds = array<i64: 1, 32>}, {pipeline_mode = #tpu.pipeline_mode<synchronous>, transform_indices = @transform_5, window_bounds = array<i64: 1, 32>}, {pipeline_mode = #tpu.pipeline_mode<synchronous>, transform_indices = @transform_6, window_bounds = array<i64: 1, 32>}, {transform_indices = @transform_7, window_bounds = array<i64: 1, 8, 32>}]} {
    %c0 = arith.constant 0 : index
    %c0_0 = arith.constant 0 : index
    %c0_1 = arith.constant 0 : index
    %0 = vector.load %arg1[%c0, %c0_0, %c0_1] : memref<1x8x32xf32, #tpu.memory_space<vmem>>, vector<1x8x32xf32>
    %1 = vector.shape_cast %0 : vector<1x8x32xf32> to vector<8x32xf32>
    %c0_2 = arith.constant 0 : index
    %c0_3 = arith.constant 0 : index
    %2 = vector.load %arg2[%c0_2, %c0_3] : memref<64x32xf32, #tpu.memory_space<vmem>>, vector<64x32xf32>
    %3 = tpu.transpose %2, [1, 0] : vector<64x32xf32> -> vector<32x64xf32>
    %cst = arith.constant dense<0.000000e+00> : vector<8x64xf32>
    %4 = tpu.matmul %1, %3, %cst {dimension_numbers = #tpu.dot_dimension_numbers<[1], [0], [0], [1], [0, 0, 1, 1], [], []>} : vector<8x32xf32>, vector<32x64xf32>, vector<8x64xf32> -> vector<8x64xf32>
    %c0_4 = arith.constant 0 : index
    %c0_5 = arith.constant 0 : index
    %5 = vector.load %arg3[%c0_4, %c0_5] : memref<1x64xf32, #tpu.memory_space<vmem>>, vector<1x64xf32>
    %6 = vector.broadcast %5 : vector<1x64xf32> to vector<8x64xf32>
    %7 = arith.addf %4, %6 : vector<8x64xf32>
    %cst_6 = arith.constant 0.000000e+00 : f32
    %8 = vector.broadcast %cst_6 : f32 to vector<8x64xf32>
    %9 = arith.maximumf %7, %8 : vector<8x64xf32>
    %c0_7 = arith.constant 0 : index
    %c0_8 = arith.constant 0 : index
    %10 = vector.load %arg4[%c0_7, %c0_8] : memref<32x64xf32, #tpu.memory_space<vmem>>, vector<32x64xf32>
    %11 = tpu.transpose %10, [1, 0] : vector<32x64xf32> -> vector<64x32xf32>
    %cst_9 = arith.constant dense<0.000000e+00> : vector<8x32xf32>
    %12 = tpu.matmul %9, %11, %cst_9 {dimension_numbers = #tpu.dot_dimension_numbers<[1], [0], [0], [1], [0, 0, 1, 1], [], []>} : vector<8x64xf32>, vector<64x32xf32>, vector<8x32xf32> -> vector<8x32xf32>
    %c0_10 = arith.constant 0 : index
    %c0_11 = arith.constant 0 : index
    %13 = vector.load %arg5[%c0_10, %c0_11] : memref<1x32xf32, #tpu.memory_space<vmem>>, vector<1x32xf32>
    %14 = vector.broadcast %13 : vector<1x32xf32> to vector<8x32xf32>
    %15 = arith.addf %12, %14 : vector<8x32xf32>
    %16 = arith.addf %1, %15 : vector<8x32xf32>
    %c0_12 = arith.constant 0 : index
    %c0_13 = arith.constant 0 : index
    %17 = vector.load %arg6[%c0_12, %c0_13] : memref<1x32xf32, #tpu.memory_space<vmem>>, vector<1x32xf32>
    %c0_14 = arith.constant 0 : index
    %c0_15 = arith.constant 0 : index
    %18 = vector.load %arg7[%c0_14, %c0_15] : memref<1x32xf32, #tpu.memory_space<vmem>>, vector<1x32xf32>
    %cst_16 = arith.constant dense<0.000000e+00> : vector<8xf32>
    %19 = vector.multi_reduction <add>, %16, %cst_16 [1] : vector<8x32xf32> to vector<8xf32>
    %20 = vector.shape_cast %19 : vector<8xf32> to vector<8x1xf32>
    %cst_17 = arith.constant 3.200000e+01 : f32
    %21 = vector.broadcast %cst_17 : f32 to vector<8x1xf32>
    %22 = arith.divf %20, %21 : vector<8x1xf32>
    %23 = vector.broadcast %22 : vector<8x1xf32> to vector<8x32xf32>
    %24 = arith.subf %16, %23 : vector<8x32xf32>
    %25 = arith.mulf %24, %24 : vector<8x32xf32>
    %cst_18 = arith.constant dense<0.000000e+00> : vector<8xf32>
    %26 = vector.multi_reduction <add>, %25, %cst_18 [1] : vector<8x32xf32> to vector<8xf32>
    %27 = vector.shape_cast %26 : vector<8xf32> to vector<8x1xf32>
    %cst_19 = arith.constant 3.200000e+01 : f32
    %28 = vector.broadcast %cst_19 : f32 to vector<8x1xf32>
    %29 = arith.divf %27, %28 : vector<8x1xf32>
    %cst_20 = arith.constant 9.99999974E-6 : f32
    %30 = vector.broadcast %cst_20 : f32 to vector<8x1xf32>
    %31 = arith.addf %29, %30 : vector<8x1xf32>
    %32 = math.rsqrt %31 : vector<8x1xf32>
    %33 = vector.broadcast %32 : vector<8x1xf32> to vector<8x32xf32>
    %34 = arith.mulf %24, %33 : vector<8x32xf32>
    %35 = vector.broadcast %17 : vector<1x32xf32> to vector<8x32xf32>
    %36 = arith.mulf %34, %35 : vector<8x32xf32>
    %37 = vector.broadcast %18 : vector<1x32xf32> to vector<8x32xf32>
    %38 = arith.addf %36, %37 : vector<8x32xf32>
    %c0_21 = arith.constant 0 : index
    %c0_22 = arith.constant 0 : index
    %c0_23 = arith.constant 0 : index
    %39 = vector.load %arg8[%c0_21, %c0_22, %c0_23] : memref<1x8x32xf32, #tpu.memory_space<vmem>>, vector<1x8x32xf32>
    %40 = vector.shape_cast %39 : vector<1x8x32xf32> to vector<8x32xf32>
    %41 = vector.shape_cast %38 : vector<8x32xf32> to vector<1x8x32xf32>
    tpu.vector_store %arg8[%c0_21, %c0_22, %c0_23], %41 {strides = array<i32>} : memref<1x8x32xf32, #tpu.memory_space<vmem>>, vector<1x8x32xf32>,
    return
  }
  func.func @transform_0(%arg0: i32) -> (i32, i32, i32) {
    %c0_i32 = arith.constant 0 : i32
    %c0_i32_0 = arith.constant 0 : i32
    %c0_i32_1 = arith.constant 0 : i32
    return %arg0, %c0_i32, %c0_i32_0 : i32, i32, i32
  }
  func.func @transform_1(%arg0: i32) -> (i32, i32) {
    %c0_i32 = arith.constant 0 : i32
    %c0_i32_0 = arith.constant 0 : i32
    %c0_i32_1 = arith.constant 0 : i32
    return %c0_i32, %c0_i32_0 : i32, i32
  }
  func.func @transform_2(%arg0: i32) -> (i32, i32) {
    %c0_i32 = arith.constant 0 : i32
    %c0_i32_0 = arith.constant 0 : i32
    %c0_i32_1 = arith.constant 0 : i32
    return %c0_i32, %c0_i32_0 : i32, i32
  }
  func.func @transform_3(%arg0: i32) -> (i32, i32) {
    %c0_i32 = arith.constant 0 : i32
    %c0_i32_0 = arith.constant 0 : i32
    %c0_i32_1 = arith.constant 0 : i32
    return %c0_i32, %c0_i32_0 : i32, i32
  }
  func.func @transform_4(%arg0: i32) -> (i32, i32) {
    %c0_i32 = arith.constant 0 : i32
    %c0_i32_0 = arith.constant 0 : i32
    %c0_i32_1 = arith.constant 0 : i32
    return %c0_i32, %c0_i32_0 : i32, i32
  }
  func.func @transform_5(%arg0: i32) -> (i32, i32) {
    %c0_i32 = arith.constant 0 : i32
    %c0_i32_0 = arith.constant 0 : i32
    %c0_i32_1 = arith.constant 0 : i32
    return %c0_i32, %c0_i32_0 : i32, i32
  }
  func.func @transform_6(%arg0: i32) -> (i32, i32) {
    %c0_i32 = arith.constant 0 : i32
    %c0_i32_0 = arith.constant 0 : i32
    %c0_i32_1 = arith.constant 0 : i32
    return %c0_i32, %c0_i32_0 : i32, i32
  }
  func.func @transform_7(%arg0: i32) -> (i32, i32, i32) {
    %c0_i32 = arith.constant 0 : i32
    %c0_i32_0 = arith.constant 0 : i32
    %c0_i32_1 = arith.constant 0 : i32
    return %arg0, %c0_i32, %c0_i32_0 : i32, i32, i32
  }
}

module attributes {stable_mosaic.version = 11 : i64} {
  func.func @_attn_sublayer_kernel(%arg0: i32, %arg1: memref<1x8x32xf32, #tpu.memory_space<vmem>>, %arg2: memref<96x32xf32, #tpu.memory_space<vmem>>, %arg3: memref<1x96xf32, #tpu.memory_space<vmem>>, %arg4: memref<32x32xf32, #tpu.memory_space<vmem>>, %arg5: memref<1x32xf32, #tpu.memory_space<vmem>>, %arg6: memref<1x32xf32, #tpu.memory_space<vmem>>, %arg7: memref<1x32xf32, #tpu.memory_space<vmem>>, %arg8: memref<1x8x32xf32, #tpu.memory_space<vmem>>) attributes {dimension_semantics = [#tpu.dimension_semantics<parallel>], iteration_bounds = array<i64: 2>, scalar_prefetch = 0 : i64, scratch_operands = 0 : i64, tpu.core_type = #tpu.core_type<tc>, window_params = [{transform_indices = @transform_0, window_bounds = array<i64: 1, 8, 32>}, {pipeline_mode = #tpu.pipeline_mode<synchronous>, transform_indices = @transform_1, window_bounds = array<i64: 96, 32>}, {pipeline_mode = #tpu.pipeline_mode<synchronous>, transform_indices = @transform_2, window_bounds = array<i64: 1, 96>}, {pipeline_mode = #tpu.pipeline_mode<synchronous>, transform_indices = @transform_3, window_bounds = array<i64: 32, 32>}, {pipeline_mode = #tpu.pipeline_mode<synchronous>, transform_indices = @transform_4, window_bounds = array<i64: 1, 32>}, {pipeline_mode = #tpu.pipeline_mode<synchronous>, transform_indices = @transform_5, window_bounds = array<i64: 1, 32>}, {pipeline_mode = #tpu.pipeline_mode<synchronous>, transform_indices = @transform_6, window_bounds = array<i64: 1, 32>}, {transform_indices = @transform_7, window_bounds = array<i64: 1, 8, 32>}]} {
    %c0 = arith.constant 0 : index
    %c0_0 = arith.constant 0 : index
    %c0_1 = arith.constant 0 : index
    %0 = vector.load %arg1[%c0, %c0_0, %c0_1] : memref<1x8x32xf32, #tpu.memory_space<vmem>>, vector<1x8x32xf32>
    %1 = vector.shape_cast %0 : vector<1x8x32xf32> to vector<8x32xf32>
    %c0_2 = arith.constant 0 : index
    %c0_3 = arith.constant 0 : index
    %2 = vector.load %arg2[%c0_2, %c0_3] : memref<96x32xf32, #tpu.memory_space<vmem>>, vector<96x32xf32>
    %c0_4 = arith.constant 0 : index
    %c0_5 = arith.constant 0 : index
    %3 = vector.load %arg3[%c0_4, %c0_5] : memref<1x96xf32, #tpu.memory_space<vmem>>, vector<1x96xf32>
    %4 = tpu.transpose %2, [1, 0] : vector<96x32xf32> -> vector<32x96xf32>
    %cst = arith.constant dense<0.000000e+00> : vector<8x96xf32>
    %5 = tpu.matmul %1, %4, %cst {dimension_numbers = #tpu.dot_dimension_numbers<[1], [0], [0], [1], [0, 0, 1, 1], [], []>} : vector<8x32xf32>, vector<32x96xf32>, vector<8x96xf32> -> vector<8x96xf32>
    %6 = vector.broadcast %3 : vector<1x96xf32> to vector<8x96xf32>
    %7 = arith.addf %5, %6 : vector<8x96xf32>
    %8 = vector.extract_strided_slice %7 {offsets = [0, 0], sizes = [8, 32], strides = [1, 1]} : vector<8x96xf32> to vector<8x32xf32>
    %9 = vector.extract_strided_slice %7 {offsets = [0, 32], sizes = [8, 32], strides = [1, 1]} : vector<8x96xf32> to vector<8x32xf32>
    %10 = vector.extract_strided_slice %7 {offsets = [0, 64], sizes = [8, 32], strides = [1, 1]} : vector<8x96xf32> to vector<8x32xf32>
    %11 = vector.extract_strided_slice %8 {offsets = [0, 0], sizes = [8, 8], strides = [1, 1]} : vector<8x32xf32> to vector<8x8xf32>
    %12 = vector.extract_strided_slice %9 {offsets = [0, 0], sizes = [8, 8], strides = [1, 1]} : vector<8x32xf32> to vector<8x8xf32>
    %13 = vector.extract_strided_slice %10 {offsets = [0, 0], sizes = [8, 8], strides = [1, 1]} : vector<8x32xf32> to vector<8x8xf32>
    %14 = tpu.transpose %12, [1, 0] : vector<8x8xf32> -> vector<8x8xf32>
    %cst_6 = arith.constant dense<0.000000e+00> : vector<8x8xf32>
    %15 = tpu.matmul %11, %14, %cst_6 {dimension_numbers = #tpu.dot_dimension_numbers<[1], [0], [0], [1], [0, 0, 1, 1], [], []>} : vector<8x8xf32>, vector<8x8xf32>, vector<8x8xf32> -> vector<8x8xf32>
    %cst_7 = arith.constant 0.353553385 : f32
    %16 = vector.broadcast %cst_7 : f32 to vector<8x8xf32>
    %17 = arith.mulf %15, %16 : vector<8x8xf32>
    %cst_8 = arith.constant dense<0xFF800000> : vector<8xf32>
    %18 = vector.multi_reduction <maximumf>, %17, %cst_8 [1] : vector<8x8xf32> to vector<8xf32>
    %19 = vector.shape_cast %18 : vector<8xf32> to vector<8x1xf32>
    %20 = vector.broadcast %19 : vector<8x1xf32> to vector<8x8xf32>
    %21 = arith.subf %17, %20 : vector<8x8xf32>
    %22 = math.exp %21 : vector<8x8xf32>
    %cst_9 = arith.constant dense<0.000000e+00> : vector<8xf32>
    %23 = vector.multi_reduction <add>, %22, %cst_9 [1] : vector<8x8xf32> to vector<8xf32>
    %24 = vector.shape_cast %23 : vector<8xf32> to vector<8x1xf32>
    %25 = vector.broadcast %24 : vector<8x1xf32> to vector<8x8xf32>
    %26 = arith.divf %22, %25 : vector<8x8xf32>
    %cst_10 = arith.constant dense<0.000000e+00> : vector<8x8xf32>
    %27 = tpu.matmul %26, %13, %cst_10 {dimension_numbers = #tpu.dot_dimension_numbers<[1], [0], [0], [1], [0, 0, 1, 1], [], []>} : vector<8x8xf32>, vector<8x8xf32>, vector<8x8xf32> -> vector<8x8xf32>
    %28 = vector.extract_strided_slice %8 {offsets = [0, 8], sizes = [8, 8], strides = [1, 1]} : vector<8x32xf32> to vector<8x8xf32>
    %29 = vector.extract_strided_slice %9 {offsets = [0, 8], sizes = [8, 8], strides = [1, 1]} : vector<8x32xf32> to vector<8x8xf32>
    %30 = vector.extract_strided_slice %10 {offsets = [0, 8], sizes = [8, 8], strides = [1, 1]} : vector<8x32xf32> to vector<8x8xf32>
    %31 = tpu.transpose %29, [1, 0] : vector<8x8xf32> -> vector<8x8xf32>
    %cst_11 = arith.constant dense<0.000000e+00> : vector<8x8xf32>
    %32 = tpu.matmul %28, %31, %cst_11 {dimension_numbers = #tpu.dot_dimension_numbers<[1], [0], [0], [1], [0, 0, 1, 1], [], []>} : vector<8x8xf32>, vector<8x8xf32>, vector<8x8xf32> -> vector<8x8xf32>
    %cst_12 = arith.constant 0.353553385 : f32
    %33 = vector.broadcast %cst_12 : f32 to vector<8x8xf32>
    %34 = arith.mulf %32, %33 : vector<8x8xf32>
    %cst_13 = arith.constant dense<0xFF800000> : vector<8xf32>
    %35 = vector.multi_reduction <maximumf>, %34, %cst_13 [1] : vector<8x8xf32> to vector<8xf32>
    %36 = vector.shape_cast %35 : vector<8xf32> to vector<8x1xf32>
    %37 = vector.broadcast %36 : vector<8x1xf32> to vector<8x8xf32>
    %38 = arith.subf %34, %37 : vector<8x8xf32>
    %39 = math.exp %38 : vector<8x8xf32>
    %cst_14 = arith.constant dense<0.000000e+00> : vector<8xf32>
    %40 = vector.multi_reduction <add>, %39, %cst_14 [1] : vector<8x8xf32> to vector<8xf32>
    %41 = vector.shape_cast %40 : vector<8xf32> to vector<8x1xf32>
    %42 = vector.broadcast %41 : vector<8x1xf32> to vector<8x8xf32>
    %43 = arith.divf %39, %42 : vector<8x8xf32>
    %cst_15 = arith.constant dense<0.000000e+00> : vector<8x8xf32>
    %44 = tpu.matmul %43, %30, %cst_15 {dimension_numbers = #tpu.dot_dimension_numbers<[1], [0], [0], [1], [0, 0, 1, 1], [], []>} : vector<8x8xf32>, vector<8x8xf32>, vector<8x8xf32> -> vector<8x8xf32>
    %45 = vector.extract_strided_slice %8 {offsets = [0, 16], sizes = [8, 8], strides = [1, 1]} : vector<8x32xf32> to vector<8x8xf32>
    %46 = vector.extract_strided_slice %9 {offsets = [0, 16], sizes = [8, 8], strides = [1, 1]} : vector<8x32xf32> to vector<8x8xf32>
    %47 = vector.extract_strided_slice %10 {offsets = [0, 16], sizes = [8, 8], strides = [1, 1]} : vector<8x32xf32> to vector<8x8xf32>
    %48 = tpu.transpose %46, [1, 0] : vector<8x8xf32> -> vector<8x8xf32>
    %cst_16 = arith.constant dense<0.000000e+00> : vector<8x8xf32>
    %49 = tpu.matmul %45, %48, %cst_16 {dimension_numbers = #tpu.dot_dimension_numbers<[1], [0], [0], [1], [0, 0, 1, 1], [], []>} : vector<8x8xf32>, vector<8x8xf32>, vector<8x8xf32> -> vector<8x8xf32>
    %cst_17 = arith.constant 0.353553385 : f32
    %50 = vector.broadcast %cst_17 : f32 to vector<8x8xf32>
    %51 = arith.mulf %49, %50 : vector<8x8xf32>
    %cst_18 = arith.constant dense<0xFF800000> : vector<8xf32>
    %52 = vector.multi_reduction <maximumf>, %51, %cst_18 [1] : vector<8x8xf32> to vector<8xf32>
    %53 = vector.shape_cast %52 : vector<8xf32> to vector<8x1xf32>
    %54 = vector.broadcast %53 : vector<8x1xf32> to vector<8x8xf32>
    %55 = arith.subf %51, %54 : vector<8x8xf32>
    %56 = math.exp %55 : vector<8x8xf32>
    %cst_19 = arith.constant dense<0.000000e+00> : vector<8xf32>
    %57 = vector.multi_reduction <add>, %56, %cst_19 [1] : vector<8x8xf32> to vector<8xf32>
    %58 = vector.shape_cast %57 : vector<8xf32> to vector<8x1xf32>
    %59 = vector.broadcast %58 : vector<8x1xf32> to vector<8x8xf32>
    %60 = arith.divf %56, %59 : vector<8x8xf32>
    %cst_20 = arith.constant dense<0.000000e+00> : vector<8x8xf32>
    %61 = tpu.matmul %60, %47, %cst_20 {dimension_numbers = #tpu.dot_dimension_numbers<[1], [0], [0], [1], [0, 0, 1, 1], [], []>} : vector<8x8xf32>, vector<8x8xf32>, vector<8x8xf32> -> vector<8x8xf32>
    %62 = vector.extract_strided_slice %8 {offsets = [0, 24], sizes = [8, 8], strides = [1, 1]} : vector<8x32xf32> to vector<8x8xf32>
    %63 = vector.extract_strided_slice %9 {offsets = [0, 24], sizes = [8, 8], strides = [1, 1]} : vector<8x32xf32> to vector<8x8xf32>
    %64 = vector.extract_strided_slice %10 {offsets = [0, 24], sizes = [8, 8], strides = [1, 1]} : vector<8x32xf32> to vector<8x8xf32>
    %65 = tpu.transpose %63, [1, 0] : vector<8x8xf32> -> vector<8x8xf32>
    %cst_21 = arith.constant dense<0.000000e+00> : vector<8x8xf32>
    %66 = tpu.matmul %62, %65, %cst_21 {dimension_numbers = #tpu.dot_dimension_numbers<[1], [0], [0], [1], [0, 0, 1, 1], [], []>} : vector<8x8xf32>, vector<8x8xf32>, vector<8x8xf32> -> vector<8x8xf32>
    %cst_22 = arith.constant 0.353553385 : f32
    %67 = vector.broadcast %cst_22 : f32 to vector<8x8xf32>
    %68 = arith.mulf %66, %67 : vector<8x8xf32>
    %cst_23 = arith.constant dense<0xFF800000> : vector<8xf32>
    %69 = vector.multi_reduction <maximumf>, %68, %cst_23 [1] : vector<8x8xf32> to vector<8xf32>
    %70 = vector.shape_cast %69 : vector<8xf32> to vector<8x1xf32>
    %71 = vector.broadcast %70 : vector<8x1xf32> to vector<8x8xf32>
    %72 = arith.subf %68, %71 : vector<8x8xf32>
    %73 = math.exp %72 : vector<8x8xf32>
    %cst_24 = arith.constant dense<0.000000e+00> : vector<8xf32>
    %74 = vector.multi_reduction <add>, %73, %cst_24 [1] : vector<8x8xf32> to vector<8xf32>
    %75 = vector.shape_cast %74 : vector<8xf32> to vector<8x1xf32>
    %76 = vector.broadcast %75 : vector<8x1xf32> to vector<8x8xf32>
    %77 = arith.divf %73, %76 : vector<8x8xf32>
    %cst_25 = arith.constant dense<0.000000e+00> : vector<8x8xf32>
    %78 = tpu.matmul %77, %64, %cst_25 {dimension_numbers = #tpu.dot_dimension_numbers<[1], [0], [0], [1], [0, 0, 1, 1], [], []>} : vector<8x8xf32>, vector<8x8xf32>, vector<8x8xf32> -> vector<8x8xf32>
    %79 = tpu.concatenate %27, %44, %61, %78 in 1 : vector<8x8xf32>, vector<8x8xf32>, vector<8x8xf32>, vector<8x8xf32> -> vector<8x32xf32>
    %c0_26 = arith.constant 0 : index
    %c0_27 = arith.constant 0 : index
    %80 = vector.load %arg4[%c0_26, %c0_27] : memref<32x32xf32, #tpu.memory_space<vmem>>, vector<32x32xf32>
    %c0_28 = arith.constant 0 : index
    %c0_29 = arith.constant 0 : index
    %81 = vector.load %arg5[%c0_28, %c0_29] : memref<1x32xf32, #tpu.memory_space<vmem>>, vector<1x32xf32>
    %82 = tpu.transpose %80, [1, 0] : vector<32x32xf32> -> vector<32x32xf32>
    %cst_30 = arith.constant dense<0.000000e+00> : vector<8x32xf32>
    %83 = tpu.matmul %79, %82, %cst_30 {dimension_numbers = #tpu.dot_dimension_numbers<[1], [0], [0], [1], [0, 0, 1, 1], [], []>} : vector<8x32xf32>, vector<32x32xf32>, vector<8x32xf32> -> vector<8x32xf32>
    %84 = vector.broadcast %81 : vector<1x32xf32> to vector<8x32xf32>
    %85 = arith.addf %83, %84 : vector<8x32xf32>
    %86 = arith.addf %1, %85 : vector<8x32xf32>
    %c0_31 = arith.constant 0 : index
    %c0_32 = arith.constant 0 : index
    %87 = vector.load %arg6[%c0_31, %c0_32] : memref<1x32xf32, #tpu.memory_space<vmem>>, vector<1x32xf32>
    %c0_33 = arith.constant 0 : index
    %c0_34 = arith.constant 0 : index
    %88 = vector.load %arg7[%c0_33, %c0_34] : memref<1x32xf32, #tpu.memory_space<vmem>>, vector<1x32xf32>
    %cst_35 = arith.constant dense<0.000000e+00> : vector<8xf32>
    %89 = vector.multi_reduction <add>, %86, %cst_35 [1] : vector<8x32xf32> to vector<8xf32>
    %90 = vector.shape_cast %89 : vector<8xf32> to vector<8x1xf32>
    %cst_36 = arith.constant 3.200000e+01 : f32
    %91 = vector.broadcast %cst_36 : f32 to vector<8x1xf32>
    %92 = arith.divf %90, %91 : vector<8x1xf32>
    %93 = vector.broadcast %92 : vector<8x1xf32> to vector<8x32xf32>
    %94 = arith.subf %86, %93 : vector<8x32xf32>
    %95 = arith.mulf %94, %94 : vector<8x32xf32>
    %cst_37 = arith.constant dense<0.000000e+00> : vector<8xf32>
    %96 = vector.multi_reduction <add>, %95, %cst_37 [1] : vector<8x32xf32> to vector<8xf32>
    %97 = vector.shape_cast %96 : vector<8xf32> to vector<8x1xf32>
    %cst_38 = arith.constant 3.200000e+01 : f32
    %98 = vector.broadcast %cst_38 : f32 to vector<8x1xf32>
    %99 = arith.divf %97, %98 : vector<8x1xf32>
    %cst_39 = arith.constant 9.99999974E-6 : f32
    %100 = vector.broadcast %cst_39 : f32 to vector<8x1xf32>
    %101 = arith.addf %99, %100 : vector<8x1xf32>
    %102 = math.rsqrt %101 : vector<8x1xf32>
    %103 = vector.broadcast %102 : vector<8x1xf32> to vector<8x32xf32>
    %104 = arith.mulf %94, %103 : vector<8x32xf32>
    %105 = vector.broadcast %87 : vector<1x32xf32> to vector<8x32xf32>
    %106 = arith.mulf %104, %105 : vector<8x32xf32>
    %107 = vector.broadcast %88 : vector<1x32xf32> to vector<8x32xf32>
    %108 = arith.addf %106, %107 : vector<8x32xf32>
    %c0_40 = arith.constant 0 : index
    %c0_41 = arith.constant 0 : index
    %c0_42 = arith.constant 0 : index
    %109 = vector.load %arg8[%c0_40, %c0_41, %c0_42] : memref<1x8x32xf32, #tpu.memory_space<vmem>>, vector<1x8x32xf32>
    %110 = vector.shape_cast %109 : vector<1x8x32xf32> to vector<8x32xf32>
    %111 = vector.shape_cast %108 : vector<8x32xf32> to vector<1x8x32xf32>
    tpu.vector_store %arg8[%c0_40, %c0_41, %c0_42], %111 {strides = array<i32>} : memref<1x8x32xf32, #tpu.memory_space<vmem>>, vector<1x8x32xf32>,
    return
  }
  func.func @transform_0(%arg0: i32) -> (i32, i32, i32) {
    %c0_i32 = arith.constant 0 : i32
    %c0_i32_0 = arith.constant 0 : i32
    %c0_i32_1 = arith.constant 0 : i32
    return %arg0, %c0_i32, %c0_i32_0 : i32, i32, i32
  }
  func.func @transform_1(%arg0: i32) -> (i32, i32) {
    %c0_i32 = arith.constant 0 : i32
    %c0_i32_0 = arith.constant 0 : i32
    %c0_i32_1 = arith.constant 0 : i32
    return %c0_i32, %c0_i32_0 : i32, i32
  }
  func.func @transform_2(%arg0: i32) -> (i32, i32) {
    %c0_i32 = arith.constant 0 : i32
    %c0_i32_0 = arith.constant 0 : i32
    %c0_i32_1 = arith.constant 0 : i32
    return %c0_i32, %c0_i32_0 : i32, i32
  }
  func.func @transform_3(%arg0: i32) -> (i32, i32) {
    %c0_i32 = arith.constant 0 : i32
    %c0_i32_0 = arith.constant 0 : i32
    %c0_i32_1 = arith.constant 0 : i32
    return %c0_i32, %c0_i32_0 : i32, i32
  }
  func.func @transform_4(%arg0: i32) -> (i32, i32) {
    %c0_i32 = arith.constant 0 : i32
    %c0_i32_0 = arith.constant 0 : i32
    %c0_i32_1 = arith.constant 0 : i32
    return %c0_i32, %c0_i32_0 : i32, i32
  }
  func.func @transform_5(%arg0: i32) -> (i32, i32) {
    %c0_i32 = arith.constant 0 : i32
    %c0_i32_0 = arith.constant 0 : i32
    %c0_i32_1 = arith.constant 0 : i32
    return %c0_i32, %c0_i32_0 : i32, i32
  }
  func.func @transform_6(%arg0: i32) -> (i32, i32) {
    %c0_i32 = arith.constant 0 : i32
    %c0_i32_0 = arith.constant 0 : i32
    %c0_i32_1 = arith.constant 0 : i32
    return %c0_i32, %c0_i32_0 : i32, i32
  }
  func.func @transform_7(%arg0: i32) -> (i32, i32, i32) {
    %c0_i32 = arith.constant 0 : i32
    %c0_i32_0 = arith.constant 0 : i32
    %c0_i32_1 = arith.constant 0 : i32
    return %arg0, %c0_i32, %c0_i32_0 : i32, i32, i32
  }
}

module attributes {stable_mosaic.version = 11 : i64} {
  func.func @_linear_kernel(%arg0: i32, %arg1: memref<1x8x32xf32, #tpu.memory_space<vmem>>, %arg2: memref<16x32xf32, #tpu.memory_space<vmem>>, %arg3: memref<1x16xf32, #tpu.memory_space<vmem>>, %arg4: memref<1x8x16xf32, #tpu.memory_space<vmem>>) attributes {dimension_semantics = [#tpu.dimension_semantics<parallel>], iteration_bounds = array<i64: 2>, scalar_prefetch = 0 : i64, scratch_operands = 0 : i64, tpu.core_type = #tpu.core_type<tc>, window_params = [{transform_indices = @transform_0, window_bounds = array<i64: 1, 8, 32>}, {pipeline_mode = #tpu.pipeline_mode<synchronous>, transform_indices = @transform_1, window_bounds = array<i64: 16, 32>}, {pipeline_mode = #tpu.pipeline_mode<synchronous>, transform_indices = @transform_2, window_bounds = array<i64: 1, 16>}, {transform_indices = @transform_3, window_bounds = array<i64: 1, 8, 16>}]} {
    %c0 = arith.constant 0 : index
    %c0_0 = arith.constant 0 : index
    %c0_1 = arith.constant 0 : index
    %0 = vector.load %arg1[%c0, %c0_0, %c0_1] : memref<1x8x32xf32, #tpu.memory_space<vmem>>, vector<1x8x32xf32>
    %1 = vector.shape_cast %0 : vector<1x8x32xf32> to vector<8x32xf32>
    %c0_2 = arith.constant 0 : index
    %c0_3 = arith.constant 0 : index
    %2 = vector.load %arg2[%c0_2, %c0_3] : memref<16x32xf32, #tpu.memory_space<vmem>>, vector<16x32xf32>
    %3 = tpu.transpose %2, [1, 0] : vector<16x32xf32> -> vector<32x16xf32>
    %cst = arith.constant dense<0.000000e+00> : vector<8x16xf32>
    %4 = tpu.matmul %1, %3, %cst {dimension_numbers = #tpu.dot_dimension_numbers<[1], [0], [0], [1], [0, 0, 1, 1], [], []>} : vector<8x32xf32>, vector<32x16xf32>, vector<8x16xf32> -> vector<8x16xf32>
    %c0_4 = arith.constant 0 : index
    %c0_5 = arith.constant 0 : index
    %5 = vector.load %arg3[%c0_4, %c0_5] : memref<1x16xf32, #tpu.memory_space<vmem>>, vector<1x16xf32>
    %6 = vector.broadcast %5 : vector<1x16xf32> to vector<8x16xf32>
    %7 = arith.addf %4, %6 : vector<8x16xf32>
    %c0_6 = arith.constant 0 : index
    %c0_7 = arith.constant 0 : index
    %c0_8 = arith.constant 0 : index
    %8 = vector.load %arg4[%c0_6, %c0_7, %c0_8] : memref<1x8x16xf32, #tpu.memory_space<vmem>>, vector<1x8x16xf32>
    %9 = vector.shape_cast %8 : vector<1x8x16xf32> to vector<8x16xf32>
    %10 = vector.shape_cast %7 : vector<8x16xf32> to vector<1x8x16xf32>
    tpu.vector_store %arg4[%c0_6, %c0_7, %c0_8], %10 {strides = array<i32>} : memref<1x8x16xf32, #tpu.memory_space<vmem>>, vector<1x8x16xf32>,
    return
  }
  func.func @transform_0(%arg0: i32) -> (i32, i32, i32) {
    %c0_i32 = arith.constant 0 : i32
    %c0_i32_0 = arith.constant 0 : i32
    %c0_i32_1 = arith.constant 0 : i32
    return %arg0, %c0_i32, %c0_i32_0 : i32, i32, i32
  }
  func.func @transform_1(%arg0: i32) -> (i32, i32) {
    %c0_i32 = arith.constant 0 : i32
    %c0_i32_0 = arith.constant 0 : i32
    %c0_i32_1 = arith.constant 0 : i32
    return %c0_i32, %c0_i32_0 : i32, i32
  }
  func.func @transform_2(%arg0: i32) -> (i32, i32) {
    %c0_i32 = arith.constant 0 : i32
    %c0_i32_0 = arith.constant 0 : i32
    %c0_i32_1 = arith.constant 0 : i32
    return %c0_i32, %c0_i32_0 : i32, i32
  }
  func.func @transform_3(%arg0: i32) -> (i32, i32, i32) {
    %c0_i32 = arith.constant 0 : i32
    %c0_i32_0 = arith.constant 0 : i32
    %c0_i32_1 = arith.constant 0 : i32
    return %arg0, %c0_i32, %c0_i32_0 : i32, i32, i32
  }
}

</mosaic_0001>

<bundles_post_ra>
// kernel: mel_decoder_forward.17
= control target key start
LH: loop header
LB: loop body
LE: loop exit
PB: predicated region body
PF: predicated region fallthrough
CT: control target
= control target key end

     0   :  { %8 = vsyncpa [#allocation3], 0  ;;  %s598_s0 = inlined_call_operand.vmem [shape: f32[2,8,32], index: 0, kind: input, shape index: {}]   ;;  %s599_s1 = inlined_call_operand.vmem [shape: f32[16,32], index: 1, kind: input, shape index: {}]   ;;  %s600_s2 = inlined_call_operand.vmem [shape: f32[1,16], index: 2, kind: input, shape index: {}]   ;;  %s601_s3 = inlined_call_operand.hbm [shape: f32[2,8,16], index: 3, kind: output, shape index: {}]  }
   0x1   :  { %10 = vsyncpa [#allocation3 + $0x1], 0  ;;  %s489_s12 = smov 0   ;;  %s491_s13 = smov 0  }
   0x2   :  { %s493_s14 = smov 0   ;;  %s495_s15 = smov 0  }
   0x3 LB: > { %s510_s16 = sadd.s32 4294967295, %s463_s15   ;;  %s331_s17 = sadd.s32 4294967294, %s463_s15   ;;  %s463_s15 = sphi %s495_s15, %s607_s15   ;;  %s459_s14 = sphi %s493_s14, %s606_s14   ;;  %s455_s13 = sphi %s491_s13, %s605_s13   ;;  %s451_s12 = sphi %s489_s12, %s604_s12  }
   0x4   : > { %s514_s18 = sadd.s32 1, %s463_s15   ;;  %s91_s19 = sadd.s32 1, %s459_s14 }
   0x5   : > { %s88_s20 = ssub.s32 %s463_s15, %s514_s18  ;;  %p101_p0 = scmp.ne.s32.totalorder %s459_s14, %s455_s13 }
   0x6   : > { %p89_p1 = scmp.eq.s32.totalorder %s88_s20, 0  ;;  %p102_p2 = scmp.eq.s32.totalorder %s510_s16, 1 }
   0x7   : > { %p107_p3 = scmp.ne.s32.totalorder %s455_s13, %s451_s12  ;;  %p108_p4 = scmp.eq.s32.totalorder %s331_s17, 1 }
   0x8   : > { %s525_s21 = scalar_select %p89_p1, %s459_s14, %s91_s19  }
   0x9   : > { %p527_p5 = por %p102_p2, %p101_p0  ;;  %p531_p6 = por %p108_p4, %p107_p3 }
   0xa   : > { %p334_p7 = scmp.ge.s32.totalorder %s463_s15, 1  ;;  %p139_p8 = scmp.lt.s32.totalorder %s463_s15, 3 }
   0xc   : > { %p140_p9 = pnand %p334_p7, %p139_p8 }
   0xd   : > { %v167_v0 = vld [vmem:[%s599_s1] sm:$0xff] (!%p140_p9)  ;;  %v168_v1 = vld [vmem:[%s599_s1 + $0x8] sm:$0xff] (!%p140_p9)  ;;  %vm176_vm0 = vcmask (!%p140_p9), 261120   ;;  %v465_v2 = vmov (!%p140_p9), 0.0|0.0   ;;  %vm466_vm2 = vmmov (!%p140_p9), 0   ;;  %v467_v4 = vmov (!%p140_p9), 0.0  }
   0xe   : > { %143 = sbr.rel (%p140_p9) target bundleno = 254 (0xfe), region = 32  ;;  %355 = vmatprep.subr.bf16.mxu0 (!%p140_p9), %v465_v2  ;;  %v356_v3 = vpack.c.bf16 (!%p140_p9), %v168_v1, %v167_v0  ;;  %vm357_vm1 = vmpackc.low (!%p140_p9), %vm176_vm0, %vm176_vm0  ;;  %352 = vmatprep.mubr.msk.f32.mxu0 (!%p140_p9), %vm466_vm2, %v467_v4  ;;  %p162_p10 = scmp.lt.s32.totalorder (!%p140_p9), %s510_s16, 1  ;;  %v337_v6 = vld [vmem:[%s600_s2] ss:$0 sm:$0xff] (!%p140_p9)  ;;  %vm256_vm3 = vcmask (!%p140_p9), 130048  }
   0xf   : > { %s159_s6 = sand.u32 (!%p140_p9), 1, %s455_s13   ;;  %s342_s10 = sshll.u32 (!%p140_p9), %s510_s16, 7 }
  0x10   : > { %358 = vmatpush3.bf16.xpose.msk.msra.mxu0 (!%p140_p9), %vm357_vm1, %v356_v3  ;;  %s335_s7 = sshll.u32 (!%p140_p9), %s159_s6, 3  ;;  %s556_s24 = scalar_lea.hbm (!%p140_p9), %s601_s3, %s342_s10 }
  0x11   : > { %s161_s11 = scalar_lea.vmem (!%p140_p9), [#allocation2], %s335_s7  ;;  %s259_s25 = scalar_lea.sflag (!%p140_p9), [#allocation3], %s159_s6 }
  0x12   : > { %s272_s17 = sshll.u32 (!%p140_p9), %s161_s11, 4  ;;  %s558_s17 = int_to_ptr.vmem [resolvable:$true] %s272_s17 }
  0x13   : > { %s401_s26 = scalar_lea.vmem (!%p140_p9), %s558_s17, 128 }
  0x14   : > { %p402_p11 = scmp.ne.s32.totalorder (!%p140_p9), %s558_s17, %s401_s26 }
  0x15   : > { %s163_s28 = scalar_select %p162_p10, %s510_s16, 1 }
  0x16   : > { %p403_p12 = pnand %p402_p11, %p527_p5  ;;  %s468_s16 = smov [#allocation2]  }
  0x17   : > { %s336_s29 = sshll.u32 %s163_s28, 3  ;;  %s405_s27 = sshll.u32 %s468_s16, 4  ;;  %s406_s27 = int_to_ptr.vmem [resolvable:$false] %s405_s27 }
  0x18   : > { %s165_s5 = scalar_lea.vmem %s598_s0, %s336_s29  ;;  %p404_p13 = pneg %p403_p12 }
  0x19   : > { %v166_v5 = vld [vmem:[%s165_s5] sm:$0xff]  ;;  %s407_s28 = scalar_lea.vmem %s406_s27, 256  ;;  %p408_p0 = scmp.lt.s32.totalorder %s558_s17, %s406_s27 }
  0x1a   : > { %353 = vmatmul.mubr.msk.f32.vlgmr.msra.gmra.mrb[0].mxu0 %vm176_vm0, %v166_v5  ;;  %p409_p1 = scmp.lt.s32.totalorder %s407_s28, %s401_s26 }
  0x1c   : > { %p410_p2 = por %p409_p1, %p408_p0 }
  0x1e   : > { %p411_p3 = pnand %p410_p2, %p404_p13 }
  0xed   : > { %v252_v7 = vpop.f32.mrb[0].mxu0 }
  0xee   : > { %v253_v8 = vadd.f32 %v337_v6, %v252_v7  ;;  %v354_v9 = vpop.f32.mrb[1].mxu0 }
  0xf0   : > { %257 = vst.msk [vmem:[%s161_s11] sm:$0xff] %vm256_vm3, %v253_v8 }
  0xf1   : > { %414 = shalt.err (!%p411_p3)
}
  0xf2   : > { %s415_s29 = scalar_lea.hbm %s556_s24, 128  ;;  %s419_s5 = scalar_lea.hbm %s601_s3, 256 }
  0xf3   : > { %p416_p4 = scmp.ne.s32.totalorder %s556_s24, %s415_s29  ;;  %p420_p9 = scmp.lt.u32.totalorder %s556_s24, %s601_s3 }
  0xf4   : > { %p421_p10 = scmp.lt.u32.totalorder %s419_s5, %s415_s29  ;;  %p423_p12 = scmp.lt.u32.totalorder %s415_s29, %s556_s24 }
  0xf5   : > { %p417_p7 = pnand %p416_p4, %p527_p5 }
  0xf6   : > { %p422_p11 = por %p421_p10, %p420_p9 }
  0xf7   : > { %p418_p8 = pneg %p417_p7 }
  0xf8   : > { %p424_p13 = por %p423_p12, %p422_p11 }
  0xfa   : > { %p425_p0 = pnand %p424_p13, %p418_p8 }
  0xfc   : > { %428 = shalt.err (!%p425_p0)
}
  0xfd   : > { %359 = dma.vmem_to_hbm [thread:$0]  (%p527_p5), %s558_s17, 128, %s556_s24, %s259_s25  }
  0xfe PF: > { %p365_p1 = scmp.ge.s32.totalorder %s463_s15, 2  ;;  %s284_s8 = sand.u32 1, %s451_s12  }
  0xff   : > { %s285_s9 = scalar_lea.sflag [#allocation3], %s284_s8 }
 0x100   : > { %p362_p2 = pnand %p365_p1, %p531_p6 }
 0x102   : > { %446 = dma.done.wait (!%p362_p2), %s285_s9, 128  }
 0x103   : > { %448 = vsyncadd (!%p362_p2), %s285_s9, 4294967168  ;;  %p13_p3 = scmp.ge.s32.totalorder %s514_s18, 4   ;;  %s604_s12 = smov %s455_s13 }
 0x104   : > { %s605_s13 = smov %s459_s14  ;;  %s606_s14 = smov %s525_s21 }
 0x105   : > { %s607_s15 = smov %s514_s18  ;;  %15 = sbr.rel (!%p13_p3) target bundleno = 3 (0x3), region = 67 }
 0x10c   :  { %290 = vsyncpa [#allocation3], 1 }
 0x10d   :  { %292 = vsyncpa [#allocation3 + $0x1], 1 }

// kernel: mel_decoder_forward.10
= control target key start
LH: loop header
LB: loop body
LE: loop exit
PB: predicated region body
PF: predicated region fallthrough
CT: control target
= control target key end

     0   :  { %s730_s24 = smov 0   ;;  %s827_s0 = inlined_call_operand.vmem [shape: f32[2,8,32], index: 0, kind: input, shape index: {}]   ;;  %s828_s1 = inlined_call_operand.vmem [shape: f32[64,32], index: 1, kind: input, shape index: {}]   ;;  %s829_s2 = inlined_call_operand.vmem [shape: f32[1,64], index: 2, kind: input, shape index: {}]   ;;  %s830_s3 = inlined_call_operand.vmem [shape: f32[32,64], index: 3, kind: input, shape index: {}]   ;;  %s831_s4 = inlined_call_operand.vmem [shape: f32[1,32], index: 4, kind: input, shape index: {}]   ;;  %s832_s5 = inlined_call_operand.vmem [shape: f32[1,32], index: 5, kind: input, shape index: {}]   ;;  %s833_s6 = inlined_call_operand.vmem [shape: f32[1,32], index: 6, kind: input, shape index: {}]   ;;  %s834_s7 = inlined_call_operand.vmem [shape: f32[2,8,32], index: 7, kind: output, shape index: {}]  }
   0x1 LB: > { %s571_s25 = sadd.s32 4294967295, %s685_s24   ;;  %p575_p0 = scmp.ge.s32.totalorder %s685_s24, 1  ;;  %s685_s24 = sphi %s730_s24, %s17_s24  }
   0x2   : > { %p236_p1 = scmp.lt.s32.totalorder %s685_s24, 3 }
   0x4   : > { %p237_p2 = pnand %p575_p0, %p236_p1 }
   0x5   : > { %v275_v0 = vld [vmem:[%s828_s1] sm:$0xff] (!%p237_p2)  ;;  %v276_v1 = vld [vmem:[%s828_s1 + $0x8] sm:$0xff] (!%p237_p2)  ;;  %vm290_vm0 = vcmask (!%p237_p2), 261120   ;;  %v687_v2 = vmov (!%p237_p2), 0.0|0.0   ;;  %vm400_vm2 = vcmask (!%p237_p2), 523264   ;;  %vm688_vm3 = vmmov (!%p237_p2), 0  }
   0x6   : > { %240 = sbr.rel (%p237_p2) target bundleno = 785 (0x311), region = 48  ;;  %642 = vmatprep.subr.bf16.mxu0 (!%p237_p2), %v687_v2  ;;  %v643_v3 = vpack.c.bf16 (!%p237_p2), %v276_v1, %v275_v0  ;;  %vm746_vm1 = vmpackc.low (!%p237_p2), %vm290_vm0, %vm290_vm0  ;;  %658 = vmatprep.subr.bf16.mxu1 (!%p237_p2), %v687_v2  ;;  %v689_v5 = vmov (!%p237_p2), 0.0   ;;  %v389_v6 = vld [vmem:[%s830_s3] sm:$0xff] (!%p237_p2)  ;;  %v390_v7 = vld [vmem:[%s830_s3 + $0x8] sm:$0xff] (!%p237_p2)  ;;  %p266_p3 = scmp.lt.s32.totalorder (!%p237_p2), %s571_s25, 1 }
   0x7   : > { %628 = vmatprep.mubr.msk.f32.mxu0 (!%p237_p2), %vm688_vm3, %v689_v5  ;;  %639 = vmatprep.mubr.msk.f32.mxu1 (!%p237_p2), %vm688_vm3, %v689_v5  ;;  %vm660_vm4 = vmpackc.low (!%p237_p2), %vm400_vm2, %vm400_vm2  ;;  %v277_v8 = vld [vmem:[%s828_s1 + $0x10] sm:$0xff] (!%p237_p2)  ;;  %v278_v9 = vld [vmem:[%s828_s1 + $0x18] sm:$0xff] (!%p237_p2)  ;;  %v659_v10 = vpack.c.bf16 (!%p237_p2), %v390_v7, %v389_v6 }
   0x8   : > { %645 = vmatpush3.bf16.xpose.msk.msra.mxu0 (!%p237_p2), %vm746_vm1, %v643_v3  ;;  %v647_v11 = vpack.c.bf16 (!%p237_p2), %v278_v9, %v277_v8  ;;  %v391_v12 = vld [vmem:[%s830_s3 + $0x10] sm:$0xff] (!%p237_p2)  ;;  %v392_v13 = vld [vmem:[%s830_s3 + $0x18] sm:$0xff] (!%p237_p2)  ;;  %v279_v15 = vld [vmem:[%s828_s1 + $0x20] sm:$0xff] (!%p237_p2) }
   0x9   : > { %646 = vmatprep.subr.bf16.mxu0 (!%p237_p2), %v687_v2  ;;  %661 = vmatpush3.bf16.xpose.msk.msra.mxu1 (!%p237_p2), %vm660_vm4, %v659_v10  ;;  %v663_v14 = vpack.c.bf16 (!%p237_p2), %v392_v13, %v391_v12  ;;  %v280_v16 = vld [vmem:[%s828_s1 + $0x28] sm:$0xff] (!%p237_p2)  ;;  %v281_v18 = vld [vmem:[%s828_s1 + $0x30] sm:$0xff] (!%p237_p2)  ;;  %v282_v19 = vld [vmem:[%s828_s1 + $0x38] sm:$0xff] (!%p237_p2) }
   0xa   : > { %662 = vmatprep.subr.bf16.mxu1 (!%p237_p2), %v687_v2  ;;  %v651_v17 = vpack.c.bf16 (!%p237_p2), %v280_v16, %v279_v15  ;;  %v655_v20 = vpack.c.bf16 (!%p237_p2), %v282_v19, %v281_v18  ;;  %v578_v22 = vld [vmem:[%s829_s2] ss:$0 sm:$0xff] (!%p237_p2) }
   0xb   : > { %v588_v27 = vld [vmem:[%s831_s4] ss:$0 sm:$0xff] (!%p237_p2) }
   0xc   : > { %v594_v42 = vld [vmem:[%s832_s5] ss:$0 sm:$0xff] (!%p237_p2) }
   0xd   : > { %s838_s25 = smov (!%p266_p3, %s571_s25), 1  ;;  %v595_v44 = vld [vmem:[%s833_s6] ss:$0 sm:$0xff] }
   0xe   : > { %s576_s29 = sshll.u32 %s838_s25, 3 }
   0xf   : > { %s269_s9 = scalar_lea.vmem %s827_s0, %s576_s29  ;;  %s273_s20 = scalar_lea.vmem %s834_s7, %s576_s29 }
  0x10   : > { %649 = vmatpush3.bf16.xpose.msk.msra.mxu0 %vm746_vm1, %v647_v11  ;;  %v274_v21 = vld [vmem:[%s269_s9] sm:$0xff] }
  0x11   : > { %650 = vmatprep.subr.bf16.mxu0 %v687_v2  ;;  %665 = vmatpush3.bf16.xpose.msk.msra.mxu1 %vm660_vm4, %v663_v14 }
  0x18   : > { %653 = vmatpush3.bf16.xpose.msk.msra.mxu0 %vm746_vm1, %v651_v17 }
  0x19   : > { %654 = vmatprep.subr.bf16.mxu0 %v687_v2 }
  0x20   : > { %657 = vmatpush3.bf16.xpose.msk.msra.mxu0 %vm746_vm1, %v655_v20 }
  0x27   : > { %629 = vmatmul.mubr.msk.f32.vlgmr.msra.gmra.mrb[0].mxu0 %vm290_vm0, %v274_v21 }
  0xfa   : > { %v384_v23 = vpop.f32.mrb[0].mxu0 }
  0xfb   : > { %v385_v24 = vadd.f32 %v578_v22, %v384_v23  ;;  %v630_v25 = vpop.f32.mrb[1].mxu0 }
  0xfd   : > { %v388_v26 = vmax.f32 %v385_v24, 0.0 }
  0xff   : > { %640 = vmatmul.mubr.msk.f32.vlgmr.msra.gmra.mrb[0].mxu1 %vm400_vm2, %v388_v26 }
 0x1d2   : > { %v482_v28 = vpop.f32.mrb[0].mxu1 }
 0x1d3   : > { %v483_v29 = vadd.f32 %v588_v27, %v482_v28  ;;  %v641_v30 = vpop.f32.mrb[1].mxu1 }
 0x1d5   : > { %v486_v31 = vadd.f32 %v483_v29, %v274_v21 }
 0x1d7   : > { %v489_v32 = vsel %vm290_vm0, %v486_v31, 0.0 }
 0x1d8   : > { %490 = vadd.xlane.f32.xlu0 %v489_v32 }
 0x265   : > { %v491_v33 = vpop.xlane.xlu0 %490 }
 0x266   : > { %v493_v34 = vmul.f32 0.03125, %v491_v33 }
 0x268   : > { %v494_v35 = vsub.f32 %v486_v31, %v493_v34 }
 0x26a   : > { %v495_v36 = vmul.f32 %v494_v35, %v494_v35 }
 0x26c   : > { %v496_v37 = vsel %vm290_vm0, %v495_v36, 0.0 }
 0x26d   : > { %497 = vadd.xlane.f32.xlu0 %v496_v37 }
 0x2fa   : > { %v498_v38 = vpop.xlane.xlu0 %497 }
 0x2fb   : > { %v499_v39 = vmul.f32 0.03125, %v498_v38 }
 0x2fd   : > { %v500_v40 = vadd.f32 1e-05, %v499_v39 }
 0x2ff   : > { %677 = vrsqrt.f32 %v500_v40 }
 0x309   : > { %v678_v41 = vpop.eup %677 }
 0x30a   : > { %v502_v43 = vmul.f32 %v678_v41, %v494_v35 }
 0x30c   : > { %v509_v45 = vmul.f32 %v594_v42, %v502_v43 }
 0x30e   : > { %v516_v46 = vadd.f32 %v595_v44, %v509_v45 }
 0x310   : > { %517 = vst.msk [vmem:[%s273_s20] sm:$0xff] %vm290_vm0, %v516_v46 }
 0x311 PF: > { %s17_s24 = sadd.s32 1, %s685_s24  }
 0x312   : > { %p14_p4 = scmp.ge.s32.totalorder %s17_s24, 4  }
 0x314   :  { %16 = sbr.rel (!%p14_p4) target bundleno = 1 (0x1), region = 78 }

// kernel: mel_decoder_forward.9
= control target key start
LH: loop header
LB: loop body
LE: loop exit
PB: predicated region body
PF: predicated region fallthrough
CT: control target
= control target key end

     0   :  { %s1561_s24 = smov 0   ;;  %s1754_s0 = inlined_call_operand.vmem [shape: f32[2,8,32], index: 0, kind: input, shape index: {}]   ;;  %s1755_s1 = inlined_call_operand.vmem [shape: f32[96,32], index: 1, kind: input, shape index: {}]   ;;  %s1756_s2 = inlined_call_operand.vmem [shape: f32[1,96], index: 2, kind: input, shape index: {}]   ;;  %s1757_s3 = inlined_call_operand.vmem [shape: f32[32,32], index: 3, kind: input, shape index: {}]   ;;  %s1758_s4 = inlined_call_operand.vmem [shape: f32[1,32], index: 4, kind: input, shape index: {}]   ;;  %s1759_s5 = inlined_call_operand.vmem [shape: f32[1,32], index: 5, kind: input, shape index: {}]   ;;  %s1760_s6 = inlined_call_operand.vmem [shape: f32[1,32], index: 6, kind: input, shape index: {}]   ;;  %s1761_s7 = inlined_call_operand.vmem [shape: f32[2,8,32], index: 7, kind: output, shape index: {}]  }
   0x1 LB: > { %s1266_s25 = sadd.s32 4294967295, %s1502_s24   ;;  %p1270_p0 = scmp.ge.s32.totalorder %s1502_s24, 1  ;;  %s1502_s24 = sphi %s1561_s24, %s17_s24  }
   0x2   : > { %p236_p1 = scmp.lt.s32.totalorder %s1502_s24, 3 }
   0x4   : > { %p237_p2 = pnand %p1270_p0, %p236_p1 }
   0x5   : > { %v275_v0 = vld [vmem:[%s1755_s1] sm:$0xff] (!%p237_p2)  ;;  %v276_v1 = vld [vmem:[%s1755_s1 + $0x8] sm:$0xff] (!%p237_p2)  ;;  %vm294_vm0 = vcmask (!%p237_p2), 261120   ;;  %v1504_v2 = vmov (!%p237_p2), 0.0|0.0   ;;  %vm1505_vm2 = vmmov (!%p237_p2), 0   ;;  %v1506_v5 = vmov (!%p237_p2), 0.0  }
   0x6   : > { %240 = sbr.rel (%p237_p2) target bundleno = 3369 (0xd29), region = 48  ;;  %1421 = vmatprep.subr.bf16.mxu0 (!%p237_p2), %v1504_v2  ;;  %v1422_v3 = vpack.c.bf16 (!%p237_p2), %v276_v1, %v275_v0  ;;  %vm1578_vm1 = vmpackc.low (!%p237_p2), %vm294_vm0, %vm294_vm0  ;;  %1367 = vmatprep.mubr.msk.f32.mxu0 (!%p237_p2), %vm1505_vm2, %v1506_v5  ;;  %v277_v6 = vld [vmem:[%s1755_s1 + $0x10] sm:$0xff] (!%p237_p2)  ;;  %v278_v7 = vld [vmem:[%s1755_s1 + $0x18] sm:$0xff] (!%p237_p2)  ;;  %p266_p3 = scmp.lt.s32.totalorder (!%p237_p2), %s1266_s25, 1  ;;  %vm407_vm3 = vcmask (!%p237_p2), 64512   ;;  %vm1081_vm4 = vcmask (!%p237_p2), 130048  }
   0x7   : > { %1370 = vmatprep.subr.mxu1 (!%p237_p2), %v1506_v5  ;;  %1372 = vmatprep.mubr.msk.f32.mxu1 (!%p237_p2), %vm1505_vm2, %v1506_v5  ;;  %v1426_v8 = vpack.c.bf16 (!%p237_p2), %v278_v7, %v277_v6  ;;  %v279_v9 = vld [vmem:[%s1755_s1 + $0x20] sm:$0xff] (!%p237_p2)  ;;  %v280_v10 = vld [vmem:[%s1755_s1 + $0x28] sm:$0xff] (!%p237_p2)  ;;  %v281_v12 = vld [vmem:[%s1755_s1 + $0x30] sm:$0xff] (!%p237_p2)  ;;  %s1507_s12 = smov (!%p237_p2), 64   ;;  %s1508_s13 = smov (!%p237_p2), 96   ;;  %vm1083_vm5 = vcmask (!%p237_p2), 195584  }
   0x8   : > { %1424 = vmatpush3.bf16.xpose.msk.msra.mxu0 (!%p237_p2), %vm1578_vm1, %v1422_v3  ;;  %v1430_v11 = vpack.c.bf16 (!%p237_p2), %v280_v10, %v279_v9  ;;  %v282_v13 = vld [vmem:[%s1755_s1 + $0x38] sm:$0xff] (!%p237_p2)  ;;  %v283_v15 = vld [vmem:[%s1755_s1 + $0x40] sm:$0xff] (!%p237_p2)  ;;  %v284_v16 = vld [vmem:[%s1755_s1 + $0x48] sm:$0xff] (!%p237_p2)  ;;  %s1509_s14 = smov (!%p237_p2), 88   ;;  %s1510_s15 = smov (!%p237_p2), 56  }
   0x9   : > { %1425 = vmatprep.subr.bf16.mxu0 (!%p237_p2), %v1504_v2  ;;  %v1434_v14 = vpack.c.bf16 (!%p237_p2), %v282_v13, %v281_v12  ;;  %v1438_v17 = vpack.c.bf16 (!%p237_p2), %v284_v16, %v283_v15  ;;  %v285_v18 = vld [vmem:[%s1755_s1 + $0x50] sm:$0xff] (!%p237_p2)  ;;  %v286_v19 = vld [vmem:[%s1755_s1 + $0x58] sm:$0xff] (!%p237_p2)  ;;  %v1273_v22 = vld [vmem:[%s1756_s2] ss:$0 sm:$0xff] (!%p237_p2)  ;;  %s1511_s16 = smov (!%p237_p2), 80   ;;  %s1512_s17 = smov (!%p237_p2), 120  }
   0xa   : > { %v1442_v20 = vpack.c.bf16 (!%p237_p2), %v286_v19, %v285_v18  ;;  %s1513_s18 = smov (!%p237_p2), 112   ;;  %s1514_s19 = smov (!%p237_p2), 48   ;;  %v1299_v4 = vld [vmem:[%s1758_s4] ss:$0 sm:$0xff] (!%p237_p2) }
   0xb   : > { %s1515_s20 = smov (!%p237_p2), 72   ;;  %s1516_s21 = smov (!%p237_p2), 104  }
   0xc   : > { %s1517_s22 = smov (!%p237_p2), 40   ;;  %s1518_s23 = smov (!%p237_p2), 8  }
   0xd   : > { %s1765_s25 = smov (!%p266_p3, %s1266_s25), 1  ;;  %s1519_s26 = smov 16  }
   0xe   : > { %s1271_s29 = sshll.u32 %s1765_s25, 3 }
   0xf   : > { %s269_s9 = scalar_lea.vmem %s1754_s0, %s1271_s29 }
  0x10   : > { %1428 = vmatpush3.bf16.xpose.msk.msra.mxu0 %vm1578_vm1, %v1426_v8  ;;  %v1646_v21 = vld [vmem:[%s269_s9] sm:$0xff] }
  0x11   : > { %1429 = vmatprep.subr.bf16.mxu0 %v1504_v2 }
  0x18   : > { %1432 = vmatpush3.bf16.xpose.msk.msra.mxu0 %vm1578_vm1, %v1430_v11 }
  0x19   : > { %1433 = vmatprep.subr.bf16.mxu0 %v1504_v2 }
  0x20   : > { %1436 = vmatpush3.bf16.xpose.msk.msra.mxu0 %vm1578_vm1, %v1434_v14 }
  0x21   : > { %1437 = vmatprep.subr.bf16.mxu0 %v1504_v2 }
  0x28   : > { %1440 = vmatpush3.bf16.xpose.msk.msra.mxu0 %vm1578_vm1, %v1438_v17 }
  0x29   : > { %1441 = vmatprep.subr.bf16.mxu0 %v1504_v2 }
  0x30   : > { %1444 = vmatpush3.bf16.xpose.msk.msra.mxu0 %vm1578_vm1, %v1442_v20 }
  0x37   : > { %1368 = vmatmul.mubr.msk.f32.vlgmr.msra.gmra.mrb[0].mxu0 %vm294_vm0, %v1646_v21 }
 0x10a   : > { %v400_v23 = vpop.f32.mrb[0].mxu0 }
 0x10b   : > { %v1653_v24 = vadd.f32 %v1273_v22, %v400_v23  ;;  %v1369_v25 = vpop.f32.mrb[1].mxu0 }
 0x10d   : > { %494 = vrot.lane.b32.xlu1 %v1653_v24, %s1507_s12  ;;  %405 = vrot.lane.b32.xlu0 %v1653_v24, %s1508_s13  ;;  %s1520_s13 = smov 24  }
 0x111   : > { %572 = vrot.lane.b32.xlu1 %v1653_v24, %s1509_s14 }
 0x17f   : > { %v406_v26 = vpop.permute.xlu0 %405  ;;  %v495_v27 = vpop.permute.xlu1 %494 }
 0x180   : > { %1371 = vmatpush3.xpose.msk.msra.mxu1 %vm407_vm3, %v406_v26 }
 0x181   : > { %1375 = vmatprep.subr.mxu1 %v1506_v5 }
 0x183   : > { %1373 = vmatmul.mubr.msk.f32.vlgmr.msra.gmra.mrb[0].mxu1 %vm407_vm3, %v1653_v24  ;;  %v573_v37 = vpop.permute.xlu1 %572 }
 0x184   : > { %1376 = vmatpush3.msra.mxu1 %v495_v27  ;;  %1377 = vmatprep.mubr.msk.f32.mxu1 %vm1505_vm2, %v1506_v5 }
 0x185   : > { %1380 = vmatprep.subr.mxu1 %v1506_v5 }
 0x256   : > { %v478_v28 = vpop.f32.mrb[0].mxu1 }
 0x257   : > { %v482_v29 = vmul.f32 0.35355338, %v478_v28  ;;  %v1374_v30 = vpop.f32.mrb[1].mxu1 }
 0x259   : > { %v483_v31 = vsel %vm407_vm3, %v482_v29, -inf }
 0x25a   : > { %484 = vmax.xlane.f32.xlu0 %v483_v31 }
 0x270   : > { %660 = vrot.lane.b32.xlu0 %v1653_v24, %s1510_s15 }
 0x274   : > { %738 = vrot.lane.b32.xlu0 %v1653_v24, %s1511_s16 }
 0x2e7   : > { %v485_v32 = vpop.xlane.xlu0 %484 }
 0x2e8   : > { %v486_v33 = vsub.f32 %v482_v29, %v485_v32  ;;  %v1086_v32 = vld [vmem:[%s1757_s3 + $0x8] sm:$0xff] }
 0x2ea   : > { %v487_v34 = vmul.f32 1.442695, %v486_v33 }
 0x2eb   : > { %v661_v42 = vpop.permute.xlu0 %660 }
 0x2ec   : > { %1478 = vpow2.f32 %v487_v34  ;;  %v1087_v34 = vld [vmem:[%s1757_s3 + $0x10] sm:$0xff] }
 0x2ef   : > { %v739_v54 = vpop.permute.xlu0 %738 }
 0x2f6   : > { %v1479_v35 = vpop.eup %1478 }
 0x2f7   : > { %v489_v36 = vsel %vm407_vm3, %v1479_v35, 0.0 }
 0x2f8   : > { %490 = vadd.xlane.f32.xlu1 %v489_v36 }
 0x309   : > { %570 = vrot.lane.b32.xlu1 %v1653_v24, %s1512_s17 }
 0x385   : > { %v491_v38 = vpop.xlane.xlu1 %490 }
 0x386   : > { %1480 = vrcp.f32 %v491_v38 }
 0x389   : > { %v571_v41 = vpop.permute.xlu1 %570 }
 0x390   : > { %v1481_v39 = vpop.eup %1480 }
 0x391   : > { %v493_v40 = vmul.f32 %v1481_v39, %v1479_v35 }
 0x393   : > { %1378 = vmatmul.mubr.msk.f32.vlgmr.msra.gmra.mrb[2].mxu1 %vm407_vm3, %v493_v40 }
 0x394   : > { %1381 = vmatpush3.xpose.msk.msra.mxu1 %vm407_vm3, %v573_v37  ;;  %1382 = vmatprep.mubr.msk.f32.mxu1 %vm1505_vm2, %v1506_v5 }
 0x395   : > { %1385 = vmatprep.subr.mxu1 %v1506_v5 }
 0x397   : > { %1383 = vmatmul.mubr.msk.f32.vlgmr.msra.gmra.mrb[4].mxu1 %vm407_vm3, %v571_v41 }
 0x398   : > { %1386 = vmatpush3.msra.mxu1 %v661_v42  ;;  %1387 = vmatprep.mubr.msk.f32.mxu1 %vm1505_vm2, %v1506_v5 }
 0x399   : > { %1390 = vmatprep.subr.mxu1 %v1506_v5 }
 0x466   : > { %v1679_v43 = vpop.f32.mrb[2].mxu1 }
 0x467   : > { %v1379_v44 = vpop.f32.mrb[3].mxu1 }
 0x46a   : > { %v644_v45 = vpop.f32.mrb[4].mxu1 }
 0x46b   : > { %v648_v46 = vmul.f32 0.35355338, %v644_v45  ;;  %v1384_v47 = vpop.f32.mrb[5].mxu1 }
 0x46d   : > { %v649_v48 = vsel %vm407_vm3, %v648_v46, -inf }
 0x46e   : > { %650 = vmax.xlane.f32.xlu1 %v649_v48 }
 0x4fb   : > { %v651_v49 = vpop.xlane.xlu1 %650 }
 0x4fc   : > { %v652_v50 = vsub.f32 %v648_v46, %v651_v49 }
 0x4fe   : > { %v653_v51 = vmul.f32 1.442695, %v652_v50 }
 0x500   : > { %1482 = vpow2.f32 %v653_v51 }
 0x50a   : > { %v1483_v52 = vpop.eup %1482 }
 0x50b   : > { %v655_v53 = vsel %vm407_vm3, %v1483_v52, 0.0 }
 0x50c   : > { %656 = vadd.xlane.f32.xlu0 %v655_v53 }
 0x522   : > { %736 = vrot.lane.b32.xlu0 %v1653_v24, %s1513_s18 }
 0x599   : > { %v657_v55 = vpop.xlane.xlu0 %656 }
 0x59a   : > { %1484 = vrcp.f32 %v657_v55 }
 0x59d   : > { %v737_v58 = vpop.permute.xlu0 %736 }
 0x5a4   : > { %v1485_v56 = vpop.eup %1484 }
 0x5a5   : > { %v659_v57 = vmul.f32 %v1485_v56, %v1483_v52 }
 0x5a7   : > { %1388 = vmatmul.mubr.msk.f32.vlgmr.msra.gmra.mrb[6].mxu1 %vm407_vm3, %v659_v57 }
 0x5a8   : > { %1391 = vmatpush3.xpose.msk.msra.mxu1 %vm407_vm3, %v739_v54  ;;  %1392 = vmatprep.mubr.msk.f32.mxu1 %vm1505_vm2, %v1506_v5 }
 0x5a9   : > { %1395 = vmatprep.subr.mxu1 %v1506_v5 }
 0x5ab   : > { %1393 = vmatmul.mubr.msk.f32.vlgmr.msra.gmra.mrb[8].mxu1 %vm407_vm3, %v737_v58  ;;  %v1306_v58 = vld [vmem:[%s1760_s6] ss:$0 sm:$0xff] }
 0x5ac   : > { %1397 = vmatprep.mubr.msk.f32.mxu1 %vm1505_vm2, %v1506_v5 }
 0x67a   : > { %v732_v59 = vpop.f32.mrb[6].mxu1 }
 0x67b   : > { %v1389_v60 = vpop.f32.mrb[7].mxu1 }
 0x67e   : > { %v810_v61 = vpop.f32.mrb[8].mxu1 }
 0x67f   : > { %v814_v62 = vmul.f32 0.35355338, %v810_v61  ;;  %v1394_v63 = vpop.f32.mrb[9].mxu1 }
 0x681   : > { %v815_v0 = vsel %vm407_vm3, %v814_v62, -inf }
 0x682   : > { %816 = vmax.xlane.f32.xlu1 %v815_v0 }
 0x693   : > { %826 = vrot.lane.b32.xlu1 %v1653_v24, %s1514_s19 }
 0x697   : > { %904 = vrot.lane.b32.xlu1 %v1653_v24, %s1515_s20 }
 0x69b   : > { %902 = vrot.lane.b32.xlu1 %v1653_v24, %s1516_s21 }
 0x70f   : > { %v817_v1 = vpop.xlane.xlu1 %816 }
 0x710   : > { %v818_v3 = vsub.f32 %v814_v62, %v817_v1 }
 0x712   : > { %v819_v6 = vmul.f32 1.442695, %v818_v3 }
 0x713   : > { %v827_v7 = vpop.permute.xlu1 %826 }
 0x714   : > { %1486 = vpow2.f32 %v819_v6  ;;  %1396 = vmatpush3.msra.mxu1 %v827_v7 }
 0x715   : > { %1400 = vmatprep.subr.mxu1 %v1506_v5 }
 0x717   : > { %v905_v12 = vpop.permute.xlu1 %904 }
 0x71b   : > { %v903_v14 = vpop.permute.xlu1 %902 }
 0x71e   : > { %v1487_v8 = vpop.eup %1486 }
 0x71f   : > { %v821_v9 = vsel %vm407_vm3, %v1487_v8, 0.0 }
 0x720   : > { %822 = vadd.xlane.f32.xlu0 %v821_v9 }
 0x7ad   : > { %v823_v10 = vpop.xlane.xlu0 %822 }
 0x7ae   : > { %1488 = vrcp.f32 %v823_v10 }
 0x7b8   : > { %v1489_v11 = vpop.eup %1488 }
 0x7b9   : > { %v825_v13 = vmul.f32 %v1489_v11, %v1487_v8 }
 0x7bb   : > { %1398 = vmatmul.mubr.msk.f32.vlgmr.msra.gmra.mrb[10].mxu1 %vm407_vm3, %v825_v13 }
 0x7bc   : > { %1401 = vmatpush3.xpose.msk.msra.mxu1 %vm407_vm3, %v905_v12  ;;  %1402 = vmatprep.mubr.msk.f32.mxu1 %vm1505_vm2, %v1506_v5 }
 0x7bd   : > { %1405 = vmatprep.subr.mxu1 %v1506_v5 }
 0x7bf   : > { %1403 = vmatmul.mubr.msk.f32.vlgmr.msra.gmra.mrb[12].mxu1 %vm407_vm3, %v903_v14 }
 0x7c0   : > { %1407 = vmatprep.mubr.msk.f32.mxu1 %vm1505_vm2, %v1506_v5 }
 0x88e   : > { %v898_v15 = vpop.f32.mrb[10].mxu1 }
 0x88f   : > { %v1399_v16 = vpop.f32.mrb[11].mxu1 }
 0x892   : > { %v976_v17 = vpop.f32.mrb[12].mxu1 }
 0x893   : > { %v980_v18 = vmul.f32 0.35355338, %v976_v17  ;;  %v1404_v19 = vpop.f32.mrb[13].mxu1 }
 0x895   : > { %v981_v20 = vsel %vm407_vm3, %v980_v18, -inf }
 0x896   : > { %982 = vmax.xlane.f32.xlu1 %v981_v20 }
 0x923   : > { %v983_v22 = vpop.xlane.xlu1 %982 }
 0x924   : > { %v984_v23 = vsub.f32 %v980_v18, %v983_v22 }
 0x926   : > { %v985_v25 = vmul.f32 1.442695, %v984_v23 }
 0x928   : > { %1490 = vpow2.f32 %v985_v25 }
 0x932   : > { %v1491_v26 = vpop.eup %1490 }
 0x933   : > { %v987_v27 = vsel %vm407_vm3, %v1491_v26, 0.0 }
 0x934   : > { %988 = vadd.xlane.f32.xlu0 %v987_v27 }
 0x94a   : > { %992 = vrot.lane.b32.xlu0 %v1653_v24, %s1517_s22  ;;  %v1085_v24 = vld [vmem:[%s1757_s3] sm:$0xff]  ;;  %s273_s22 = scalar_lea.vmem %s1761_s7, %s1271_s29 }
 0x94b   : > { %v1446_v33 = vpack.c.bf16 %v1086_v32, %v1085_v24 }
 0x94e   : > { %1069 = vrot.lane.b32.xlu0 %v732_v59, %s1518_s23 }
 0x952   : > { %1073 = vrot.lane.b32.xlu0 %v898_v15, %s1519_s26 }
 0x9c1   : > { %v989_v28 = vpop.xlane.xlu0 %988 }
 0x9c2   : > { %1492 = vrcp.f32 %v989_v28 }
 0x9c5   : > { %v993_v29 = vpop.permute.xlu0 %992 }
 0x9c6   : > { %1406 = vmatpush3.msra.mxu1 %v993_v29 }
 0x9c7   : > { %1445 = vmatprep.subr.bf16.mxu1 %v1504_v2 }
 0x9c9   : > { %v1070_v38 = vpop.permute.xlu0 %1069 }
 0x9cc   : > { %v1493_v30 = vpop.eup %1492 }
 0x9cd   : > { %v991_v31 = vmul.f32 %v1493_v30, %v1491_v26  ;;  %v1074_v39 = vpop.permute.xlu0 %1073 }
 0x9cf   : > { %1408 = vmatmul.mubr.msk.f32.vlgmr.msra.gmra.mrb[14].mxu1 %vm407_vm3, %v991_v31 }
 0x9d0   : > { %1418 = vmatprep.mubr.msk.f32.mxu1 %vm1505_vm2, %v1506_v5  ;;  %1448 = vmatpush3.bf16.xpose.msk.msra.mxu1 %vm1578_vm1, %v1446_v33  ;;  %v1088_v5 = vld [vmem:[%s1757_s3 + $0x18] sm:$0xff] }
 0x9d1   : > { %1449 = vmatprep.subr.bf16.mxu1 %v1504_v2  ;;  %v1450_v35 = vpack.c.bf16 %v1088_v5, %v1087_v34  ;;  %v1080_v2 = vsel %vm407_vm3, %v1679_v43, %v1070_v38 }
 0x9d2   : > { %v1082_v40 = vsel %vm1081_vm4, %v1080_v2, %v1074_v39 }
 0x9d8   : > { %1452 = vmatpush3.bf16.xpose.msk.msra.mxu1 %vm1578_vm1, %v1450_v35 }
 0xaa2   : > { %v1064_v36 = vpop.f32.mrb[14].mxu1 }
 0xaa3   : > { %1077 = vrot.lane.b32.xlu1 %v1064_v36, %s1520_s13  ;;  %v1409_v37 = vpop.f32.mrb[15].mxu1 }
 0xb15   : > { %v1078_v41 = vpop.permute.xlu1 %1077 }
 0xb16   : > { %v1084_v42 = vsel %vm1083_vm5, %v1082_v40, %v1078_v41 }
 0xb17   : > { %1419 = vmatmul.mubr.msk.f32.vlgmr.msra.gmra.mrb[16].mxu1 %vm294_vm0, %v1084_v42 }
 0xbea   : > { %v1177_v44 = vpop.f32.mrb[16].mxu1 }
 0xbeb   : > { %v1178_v45 = vadd.f32 %v1299_v4, %v1177_v44  ;;  %v1420_v46 = vpop.f32.mrb[17].mxu1 }
 0xbed   : > { %v1181_v47 = vadd.f32 %v1178_v45, %v1646_v21  ;;  %v1305_v21 = vld [vmem:[%s1759_s5] ss:$0 sm:$0xff] }
 0xbef   : > { %v1184_v48 = vsel %vm294_vm0, %v1181_v47, 0.0 }
 0xbf0   : > { %1185 = vadd.xlane.f32.xlu0 %v1184_v48 }
 0xc7d   : > { %v1186_v49 = vpop.xlane.xlu0 %1185 }
 0xc7e   : > { %v1188_v43 = vmul.f32 0.03125, %v1186_v49 }
 0xc80   : > { %v1189_v50 = vsub.f32 %v1181_v47, %v1188_v43 }
 0xc82   : > { %v1190_v51 = vmul.f32 %v1189_v50, %v1189_v50 }
 0xc84   : > { %v1191_v52 = vsel %vm294_vm0, %v1190_v51, 0.0 }
 0xc85   : > { %1192 = vadd.xlane.f32.xlu1 %v1191_v52 }
 0xd12   : > { %v1193_v53 = vpop.xlane.xlu1 %1192 }
 0xd13   : > { %v1194_v54 = vmul.f32 0.03125, %v1193_v53 }
 0xd15   : > { %v1195_v55 = vadd.f32 1e-05, %v1194_v54 }
 0xd17   : > { %1494 = vrsqrt.f32 %v1195_v55 }
 0xd21   : > { %v1495_v56 = vpop.eup %1494 }
 0xd22   : > { %v1197_v57 = vmul.f32 %v1495_v56, %v1189_v50 }
 0xd24   : > { %v1204_v59 = vmul.f32 %v1305_v21, %v1197_v57 }
 0xd26   : > { %v1211_v60 = vadd.f32 %v1306_v58, %v1204_v59 }
 0xd28   : > { %1212 = vst.msk [vmem:[%s273_s22] sm:$0xff] %vm294_vm0, %v1211_v60 }
 0xd29 PF: > { %s17_s24 = sadd.s32 1, %s1502_s24  }
 0xd2a   : > { %p14_p4 = scmp.ge.s32.totalorder %s17_s24, 4  }
 0xd2c   :  { %16 = sbr.rel (!%p14_p4) target bundleno = 1 (0x1), region = 78 }

</bundles_post_ra>
